<compile_context>
chip_gen: v7x
topology: tpu7x:2x2x1
jax: 0.10.0
libtpu: 0.0.40
codegen_flags: <defaults>
</compile_context>

<pallas_src>
import functools

import jax
import jax.numpy as jnp
from jax.experimental import pallas as pl
from jax.experimental.pallas import tpu as pltpu


def _bahdanau_kernel(dh_ref, hh_ref, att_ref, u_ref, w2_ref, c_ref, alpha_ref,
                     *, dense_outputs):
    # dh_ref:    (tb, 1, H)  decoder hidden state (batch tile)
    # hh_ref:    (tb, S, V)  Batch_decoder_input_hh
    # att_ref:   (tb, S, A)  Batch_Decoder_Input_Attender
    # u_ref:     (1, H)      hoisted fold  w2 @ W1   (grid-invariant, VMEM-resident)
    # w2_ref:    (1, V)      decoder_mapper_mlp.weight (torch layout)
    # c_ref:     (tb, A)   or (tb, 1, A)   context output
    # alpha_ref: (tb, S)   or (tb, S, 1)   attention weights
    f32 = jnp.float32

    u = u_ref[...].astype(f32)                                   # (1, H)
    w2 = w2_ref[...].astype(f32)                                 # (1, V)
    dh = dh_ref[...].astype(f32)                                 # (tb, 1, H)
    hh = hh_ref[...].astype(f32)                                 # (tb, S, V)

    # beta[b, s] = sum_v (out_hh[b, v] + hh[b, s, v]) * w2[v]
    #            = sum_h dh[b, h] * u[h]  +  sum_v hh[b, s, v] * w2[v]
    bias = jnp.sum(dh * u, axis=-1, keepdims=True)               # (tb, 1, 1)
    beta = jnp.sum(hh * w2, axis=-1, keepdims=True) + bias       # (tb, S, 1)

    # softmax over the sequence axis (torch dim=1)
    m = jnp.max(beta, axis=1, keepdims=True)                     # (tb, 1, 1)
    e = jnp.exp(beta - m)                                        # (tb, S, 1)
    denom = jnp.sum(e, axis=1, keepdims=True)                    # (tb, 1, 1)
    alpha = e * pl.reciprocal(denom, approx=False)               # (tb, S, 1)

    att = att_ref[...].astype(f32)                               # (tb, S, A)
    c = jnp.sum(att * alpha, axis=1, keepdims=True)              # (tb, 1, A)

    if dense_outputs:
        # Lane-dense stores: (tb, A) and (tb, S) blocks avoid the 8x / 128x
        # VMEM padding of the (tb, 1, A) / (tb, S, 1) tiles and the masked
        # narrow vst pattern; the relayout happens once per tile.
        c_ref[...] = jnp.reshape(c, c_ref.shape).astype(c_ref.dtype)
        alpha_ref[...] = jnp.reshape(alpha, alpha_ref.shape).astype(alpha_ref.dtype)
    else:
        c_ref[...] = c.astype(c_ref.dtype)
        alpha_ref[...] = alpha.astype(alpha_ref.dtype)


def _round_up(x, m):
    return ((x + m - 1) // m) * m


def _vmem_budget():
    """(tile working-set budget, scoped vmem limit) derived from the chip."""
    cap = 64 << 20
    try:
        cap = int(pltpu.get_tpu_info().vmem_capacity_bytes)
    except Exception:
        pass
    if cap >= (96 << 20):          # v5e / v6e: 128 MiB physical VMEM
        limit = 64 << 20
    else:                          # v7x: 64 MiB physical VMEM per TensorCore
        limit = 40 << 20
    return limit - (8 << 20), limit


def _padded_tile_bytes(tb, S, V, A, H, dense_outputs):
    """Padded (sublane->8, lane->128), double-buffered VMEM bytes for one grid step."""
    r8 = lambda x: _round_up(x, 8)
    r128 = lambda x: _round_up(x, 128)
    hh = tb * r8(S) * r128(V)
    att = tb * r8(S) * r128(A)
    dh = tb * 8 * r128(H)
    if dense_outputs:
        c_t = r8(tb) * r128(A)
        a_t = r8(tb) * r128(S)
    else:
        c_t = tb * 8 * r128(A)
        a_t = tb * r8(S) * 128
    u_t = 8 * r128(H)
    w2_t = 8 * r128(V)
    io = 2 * (hh + att + dh + c_t + a_t + u_t + w2_t)   # x2 pipeline buffers
    interm = 3 * tb * r8(S) * 128                       # beta/e/alpha in (tb,S,1) layout
    return 4 * (io + interm)


def _pick_batch_tile(B, S, V, A, H, dense_outputs, budget_bytes):
    if B <= 8:
        return B
    # Keep >= 2 grid steps when B is large enough so the "parallel" batch axis
    # can be sharded across v7x's 2 TensorCores (no effect on v5e/v6e).
    cap = _round_up(pl.cdiv(B, 2), 8) if B >= 16 else 8
    cap = min(cap, 512)
    tb = cap
    while tb > 8 and _padded_tile_bytes(tb, S, V, A, H, dense_outputs) > budget_bytes:
        tb -= 8
    return tb


def _pallas_forward(dh3, hh, att, u, w2, *, dense_outputs):
    B, _, H = dh3.shape
    _, S, V = hh.shape
    _, _, A = att.shape
    out_dtype = dh3.dtype

    budget_bytes, vmem_limit = _vmem_budget()
    tb = _pick_batch_tile(B, S, V, A, H, dense_outputs, budget_bytes)
    grid = (pl.cdiv(B, tb),)

    if dense_outputs:
        out_shape = (jax.ShapeDtypeStruct((B, A), out_dtype),
                     jax.ShapeDtypeStruct((B, S), out_dtype))
        out_specs = (pl.BlockSpec((tb, A), lambda i: (i, 0)),
                     pl.BlockSpec((tb, S), lambda i: (i, 0)))
    else:
        out_shape = (jax.ShapeDtypeStruct((B, 1, A), out_dtype),
                     jax.ShapeDtypeStruct((B, S, 1), out_dtype))
        out_specs = (pl.BlockSpec((tb, 1, A), lambda i: (i, 0, 0)),
                     pl.BlockSpec((tb, S, 1), lambda i: (i, 0, 0)))

    cost = pl.CostEstimate(
        flops=int(2 * B * S * (V + A) + 2 * B * H + 6 * B * S),
        transcendentals=int(B * S),
        bytes_accessed=int(4 * (B * S * (V + A) + B * (H + A + S) + H + V)),
    )

    kernel = functools.partial(_bahdanau_kernel, dense_outputs=dense_outputs)

    return pl.pallas_call(
        kernel,
        out_shape=out_shape,
        grid_spec=pltpu.PrefetchScalarGridSpec(
            num_scalar_prefetch=0,
            grid=grid,
            in_specs=[
                pl.BlockSpec((tb, 1, H), lambda i: (i, 0, 0)),
                pl.BlockSpec((tb, S, V), lambda i: (i, 0, 0)),
                pl.BlockSpec((tb, S, A), lambda i: (i, 0, 0)),
                pl.BlockSpec((1, H), lambda i: (0, 0)),     # u,  VMEM-resident
                pl.BlockSpec((1, V), lambda i: (0, 0)),     # w2, VMEM-resident
            ],
            out_specs=out_specs,
        ),
        compiler_params=pltpu.CompilerParams(
            dimension_semantics=("parallel",),
            vmem_limit_bytes=int(vmem_limit),
        ),
        cost_estimate=cost,
    )(dh3, hh, att, u, w2)


# Cached result of probing whether the lane-dense output variant lowers on
# this jaxlib/Mosaic version.  If not, fall back to the previously-validated
# (B, 1, A) / (B, S, 1) output layout (identical math, only the stores differ).
_DENSE_OUTPUTS_OK = None


def bahdanau_attention(decoder_hidden_state, batch_decoder_input_hh,
                       batch_decoder_input_attender, w1, w2):
    """Fused Bahdanau attention forward.

    decoder_hidden_state:         (B, H)
    batch_decoder_input_hh:       (B, S, V)
    batch_decoder_input_attender: (B, S, A)
    w1: (V, H)  -- nn.Linear(H, V, bias=False).weight
    w2: (1, V)  -- nn.Linear(V, 1, bias=False).weight
    returns (c: (B, A), alpha: (B, S, 1))   -- same as the torch module
    """
    global _DENSE_OUTPUTS_OK

    B, H = decoder_hidden_state.shape
    Bh, S, V = batch_decoder_input_hh.shape
    Ba, Sa, A = batch_decoder_input_attender.shape
    assert Bh == B and Ba == B and Sa == S
    assert w1.shape == (V, H) and w2.shape == (1, V)

    # Hoisted, grid-invariant weight fold: (dh @ W1^T) @ w2^T == dh @ (w2 @ W1)^T
    # (exact up to fp reassociation; removes the M=1 matmul and the (V, H)
    #  resident weight from the kernel).
    u = jnp.dot(w2.astype(jnp.float32), w1.astype(jnp.float32))   # (1, H)
    dh3 = decoder_hidden_state.reshape(B, 1, H)                   # free metadata reshape

    args = (dh3, batch_decoder_input_hh, batch_decoder_input_attender, u, w2)

    if _DENSE_OUTPUTS_OK is None:
        try:
            c2, a2 = jax.block_until_ready(_pallas_forward(*args, dense_outputs=True))
            _DENSE_OUTPUTS_OK = True
            return c2, a2.reshape(B, S, 1)
        except Exception:
            _DENSE_OUTPUTS_OK = False
    if _DENSE_OUTPUTS_OK:
        c2, a2 = _pallas_forward(*args, dense_outputs=True)
        return c2, a2.reshape(B, S, 1)

    c3, a3 = _pallas_forward(*args, dense_outputs=False)
    return c3.reshape(B, A), a3


if __name__ == "__main__":
    batch, seq = 2, 8
    decoder_hidden_size = 32   # H
    v_size = 32                # V
    attender_size = 32         # A

    key = jax.random.PRNGKey(0)
    k_dh, k_hh, k_att, k_w1, k_w2 = jax.random.split(key, 5)

    dh = jax.random.normal(k_dh, (batch, decoder_hidden_size), dtype=jnp.float32)
    hh = jax.random.normal(k_hh, (batch, seq, v_size), dtype=jnp.float32)
    att = jax.random.normal(k_att, (batch, seq, attender_size), dtype=jnp.float32)

    # nn.Linear default init: U(-1/sqrt(in_features), 1/sqrt(in_features)).
    b1 = 1.0 / jnp.sqrt(jnp.float32(decoder_hidden_size))
    w1 = jax.random.uniform(k_w1, (v_size, decoder_hidden_size),
                            dtype=jnp.float32, minval=-b1, maxval=b1)
    b2 = 1.0 / jnp.sqrt(jnp.float32(v_size))
    w2 = jax.random.uniform(k_w2, (1, v_size),
                            dtype=jnp.float32, minval=-b2, maxval=b2)

    c, alpha = bahdanau_attention(dh, hh, att, w1, w2)
    c, alpha = jax.block_until_ready((c, alpha))

    # Pure-JAX reference replicating the PyTorch forward literally.
    out_hh_ref = dh @ w1.T                                     # (B, V)
    beta_ref = (out_hh_ref[:, None, :] + hh) @ w2.T            # (B, S, 1)
    alpha_ref = jax.nn.softmax(beta_ref, axis=1)               # (B, S, 1)
    c_ref = jnp.sum(alpha_ref * att, axis=1)                   # (B, A)

    assert c.shape == (batch, attender_size)
    assert alpha.shape == (batch, seq, 1)
    assert jnp.allclose(alpha, alpha_ref, atol=1e-5, rtol=1e-5)
    assert jnp.allclose(c, c_ref, atol=1e-5, rtol=1e-5)

    print("KERNEL_OK")
</pallas_src>

<mosaic_0001>
module attributes {stable_mosaic.version = 11 : i64} {
  func.func @_bahdanau_kernel(%arg0: i32, %arg1: memref<2x1x32xf32, #tpu.memory_space<vmem>>, %arg2: memref<2x8x32xf32, #tpu.memory_space<vmem>>, %arg3: memref<2x8x32xf32, #tpu.memory_space<vmem>>, %arg4: memref<1x32xf32, #tpu.memory_space<vmem>>, %arg5: memref<1x32xf32, #tpu.memory_space<vmem>>, %arg6: memref<2x32xf32, #tpu.memory_space<vmem>>, %arg7: memref<2x8xf32, #tpu.memory_space<vmem>>) attributes {dimension_semantics = [#tpu.dimension_semantics<parallel>], iteration_bounds = array<i64: 1>, scalar_prefetch = 0 : i64, scratch_operands = 0 : i64, tpu.core_type = #tpu.core_type<tc>, window_params = [{transform_indices = @transform_0, window_bounds = array<i64: 2, 1, 32>}, {transform_indices = @transform_1, window_bounds = array<i64: 2, 8, 32>}, {transform_indices = @transform_2, window_bounds = array<i64: 2, 8, 32>}, {pipeline_mode = #tpu.pipeline_mode<synchronous>, transform_indices = @transform_3, window_bounds = array<i64: 1, 32>}, {pipeline_mode = #tpu.pipeline_mode<synchronous>, transform_indices = @transform_4, window_bounds = array<i64: 1, 32>}, {transform_indices = @transform_5, window_bounds = array<i64: 2, 32>}, {transform_indices = @transform_6, window_bounds = array<i64: 2, 8>}]} {
    %c0 = arith.constant 0 : index
    %c0_0 = arith.constant 0 : index
    %0 = vector.load %arg4[%c0, %c0_0] : memref<1x32xf32, #tpu.memory_space<vmem>>, vector<1x32xf32>
    %c0_1 = arith.constant 0 : index
    %c0_2 = arith.constant 0 : index
    %1 = vector.load %arg5[%c0_1, %c0_2] : memref<1x32xf32, #tpu.memory_space<vmem>>, vector<1x32xf32>
    %c0_3 = arith.constant 0 : index
    %c0_4 = arith.constant 0 : index
    %c0_5 = arith.constant 0 : index
    %2 = vector.load %arg1[%c0_3, %c0_4, %c0_5] : memref<2x1x32xf32, #tpu.memory_space<vmem>>, vector<2x1x32xf32>
    %c0_6 = arith.constant 0 : index
    %c0_7 = arith.constant 0 : index
    %c0_8 = arith.constant 0 : index
    %3 = vector.load %arg2[%c0_6, %c0_7, %c0_8] : memref<2x8x32xf32, #tpu.memory_space<vmem>>, vector<2x8x32xf32>
    %4 = vector.shape_cast %0 : vector<1x32xf32> to vector<1x1x32xf32>
    %5 = vector.broadcast %4 : vector<1x1x32xf32> to vector<2x1x32xf32>
    %6 = arith.mulf %2, %5 : vector<2x1x32xf32>
    %cst = arith.constant dense<0.000000e+00> : vector<2x1xf32>
    %7 = vector.multi_reduction <add>, %6, %cst [2] : vector<2x1x32xf32> to vector<2x1xf32>
    %8 = vector.shape_cast %7 : vector<2x1xf32> to vector<2x1x1xf32>
    %9 = vector.shape_cast %1 : vector<1x32xf32> to vector<1x1x32xf32>
    %10 = vector.broadcast %9 : vector<1x1x32xf32> to vector<2x8x32xf32>
    %11 = arith.mulf %3, %10 : vector<2x8x32xf32>
    %cst_9 = arith.constant dense<0.000000e+00> : vector<2x8xf32>
    %12 = vector.multi_reduction <add>, %11, %cst_9 [2] : vector<2x8x32xf32> to vector<2x8xf32>
    %13 = vector.shape_cast %12 : vector<2x8xf32> to vector<2x8x1xf32>
    %14 = vector.broadcast %8 : vector<2x1x1xf32> to vector<2x8x1xf32>
    %15 = arith.addf %13, %14 : vector<2x8x1xf32>
    %cst_10 = arith.constant dense<0xFF800000> : vector<2x1xf32>
    %16 = vector.multi_reduction <maximumf>, %15, %cst_10 [1] : vector<2x8x1xf32> to vector<2x1xf32>
    %17 = vector.shape_cast %16 : vector<2x1xf32> to vector<2x1x1xf32>
    %18 = vector.broadcast %17 : vector<2x1x1xf32> to vector<2x8x1xf32>
    %19 = arith.subf %15, %18 : vector<2x8x1xf32>
    %20 = math.exp %19 : vector<2x8x1xf32>
    %cst_11 = arith.constant dense<0.000000e+00> : vector<2x1xf32>
    %21 = vector.multi_reduction <add>, %20, %cst_11 [1] : vector<2x8x1xf32> to vector<2x1xf32>
    %22 = vector.shape_cast %21 : vector<2x1xf32> to vector<2x1x1xf32>
    %23 = tpu.reciprocal %22 : vector<2x1x1xf32> -> vector<2x1x1xf32>
    %24 = vector.broadcast %23 : vector<2x1x1xf32> to vector<2x8x1xf32>
    %25 = arith.mulf %20, %24 : vector<2x8x1xf32>
    %c0_12 = arith.constant 0 : index
    %c0_13 = arith.constant 0 : index
    %c0_14 = arith.constant 0 : index
    %26 = vector.load %arg3[%c0_12, %c0_13, %c0_14] : memref<2x8x32xf32, #tpu.memory_space<vmem>>, vector<2x8x32xf32>
    %27 = vector.broadcast %25 : vector<2x8x1xf32> to vector<2x8x32xf32>
    %28 = arith.mulf %26, %27 : vector<2x8x32xf32>
    %cst_15 = arith.constant dense<0.000000e+00> : vector<2x32xf32>
    %29 = vector.multi_reduction <add>, %28, %cst_15 [1] : vector<2x8x32xf32> to vector<2x32xf32>
    %30 = vector.shape_cast %29 : vector<2x32xf32> to vector<2x1x32xf32>
    %31 = vector.shape_cast %30 : vector<2x1x32xf32> to vector<2x32xf32>
    %c0_16 = arith.constant 0 : index
    %c0_17 = arith.constant 0 : index
    %32 = vector.load %arg6[%c0_16, %c0_17] : memref<2x32xf32, #tpu.memory_space<vmem>>, vector<2x32xf32>
    tpu.vector_store %arg6[%c0_16, %c0_17], %31 {strides = array<i32>} : memref<2x32xf32, #tpu.memory_space<vmem>>, vector<2x32xf32>,
    %33 = vector.shape_cast %25 : vector<2x8x1xf32> to vector<2x8xf32>
    %c0_18 = arith.constant 0 : index
    %c0_19 = arith.constant 0 : index
    %34 = vector.load %arg7[%c0_18, %c0_19] : memref<2x8xf32, #tpu.memory_space<vmem>>, vector<2x8xf32>
    tpu.vector_store %arg7[%c0_18, %c0_19], %33 {strides = array<i32>} : memref<2x8xf32, #tpu.memory_space<vmem>>, vector<2x8xf32>,
    return
  }
  func.func @transform_0(%arg0: i32) -> (i32, i32, i32) {
    %c0_i32 = arith.constant 0 : i32
    %c0_i32_0 = arith.constant 0 : i32
    %c0_i32_1 = arith.constant 0 : i32
    return %arg0, %c0_i32, %c0_i32_0 : i32, i32, i32
  }
  func.func @transform_1(%arg0: i32) -> (i32, i32, i32) {
    %c0_i32 = arith.constant 0 : i32
    %c0_i32_0 = arith.constant 0 : i32
    %c0_i32_1 = arith.constant 0 : i32
    return %arg0, %c0_i32, %c0_i32_0 : i32, i32, i32
  }
  func.func @transform_2(%arg0: i32) -> (i32, i32, i32) {
    %c0_i32 = arith.constant 0 : i32
    %c0_i32_0 = arith.constant 0 : i32
    %c0_i32_1 = arith.constant 0 : i32
    return %arg0, %c0_i32, %c0_i32_0 : i32, i32, i32
  }
  func.func @transform_3(%arg0: i32) -> (i32, i32) {
    %c0_i32 = arith.constant 0 : i32
    %c0_i32_0 = arith.constant 0 : i32
    %c0_i32_1 = arith.constant 0 : i32
    return %c0_i32, %c0_i32_0 : i32, i32
  }
  func.func @transform_4(%arg0: i32) -> (i32, i32) {
    %c0_i32 = arith.constant 0 : i32
    %c0_i32_0 = arith.constant 0 : i32
    %c0_i32_1 = arith.constant 0 : i32
    return %c0_i32, %c0_i32_0 : i32, i32
  }
  func.func @transform_5(%arg0: i32) -> (i32, i32) {
    %c0_i32 = arith.constant 0 : i32
    %c0_i32_0 = arith.constant 0 : i32
    return %arg0, %c0_i32 : i32, i32
  }
  func.func @transform_6(%arg0: i32) -> (i32, i32) {
    %c0_i32 = arith.constant 0 : i32
    %c0_i32_0 = arith.constant 0 : i32
    return %arg0, %c0_i32 : i32, i32
  }
}

module attributes {stable_mosaic.version = 11 : i64} {
  func.func @_bahdanau_kernel(%arg0: i32, %arg1: memref<2x1x32xf32, #tpu.memory_space<vmem>>, %arg2: memref<2x8x32xf32, #tpu.memory_space<vmem>>, %arg3: memref<2x8x32xf32, #tpu.memory_space<vmem>>, %arg4: memref<1x32xf32, #tpu.memory_space<vmem>>, %arg5: memref<1x32xf32, #tpu.memory_space<vmem>>, %arg6: memref<2x1x32xf32, #tpu.memory_space<vmem>>, %arg7: memref<2x8x1xf32, #tpu.memory_space<vmem>>) attributes {dimension_semantics = [#tpu.dimension_semantics<parallel>], iteration_bounds = array<i64: 1>, scalar_prefetch = 0 : i64, scratch_operands = 0 : i64, tpu.core_type = #tpu.core_type<tc>, window_params = [{transform_indices = @transform_0, window_bounds = array<i64: 2, 1, 32>}, {transform_indices = @transform_1, window_bounds = array<i64: 2, 8, 32>}, {transform_indices = @transform_2, window_bounds = array<i64: 2, 8, 32>}, {pipeline_mode = #tpu.pipeline_mode<synchronous>, transform_indices = @transform_3, window_bounds = array<i64: 1, 32>}, {pipeline_mode = #tpu.pipeline_mode<synchronous>, transform_indices = @transform_4, window_bounds = array<i64: 1, 32>}, {transform_indices = @transform_5, window_bounds = array<i64: 2, 1, 32>}, {transform_indices = @transform_6, window_bounds = array<i64: 2, 8, 1>}]} {
    %c0 = arith.constant 0 : index
    %c0_0 = arith.constant 0 : index
    %0 = vector.load %arg4[%c0, %c0_0] : memref<1x32xf32, #tpu.memory_space<vmem>>, vector<1x32xf32>
    %c0_1 = arith.constant 0 : index
    %c0_2 = arith.constant 0 : index
    %1 = vector.load %arg5[%c0_1, %c0_2] : memref<1x32xf32, #tpu.memory_space<vmem>>, vector<1x32xf32>
    %c0_3 = arith.constant 0 : index
    %c0_4 = arith.constant 0 : index
    %c0_5 = arith.constant 0 : index
    %2 = vector.load %arg1[%c0_3, %c0_4, %c0_5] : memref<2x1x32xf32, #tpu.memory_space<vmem>>, vector<2x1x32xf32>
    %c0_6 = arith.constant 0 : index
    %c0_7 = arith.constant 0 : index
    %c0_8 = arith.constant 0 : index
    %3 = vector.load %arg2[%c0_6, %c0_7, %c0_8] : memref<2x8x32xf32, #tpu.memory_space<vmem>>, vector<2x8x32xf32>
    %4 = vector.shape_cast %0 : vector<1x32xf32> to vector<1x1x32xf32>
    %5 = vector.broadcast %4 : vector<1x1x32xf32> to vector<2x1x32xf32>
    %6 = arith.mulf %2, %5 : vector<2x1x32xf32>
    %cst = arith.constant dense<0.000000e+00> : vector<2x1xf32>
    %7 = vector.multi_reduction <add>, %6, %cst [2] : vector<2x1x32xf32> to vector<2x1xf32>
    %8 = vector.shape_cast %7 : vector<2x1xf32> to vector<2x1x1xf32>
    %9 = vector.shape_cast %1 : vector<1x32xf32> to vector<1x1x32xf32>
    %10 = vector.broadcast %9 : vector<1x1x32xf32> to vector<2x8x32xf32>
    %11 = arith.mulf %3, %10 : vector<2x8x32xf32>
    %cst_9 = arith.constant dense<0.000000e+00> : vector<2x8xf32>
    %12 = vector.multi_reduction <add>, %11, %cst_9 [2] : vector<2x8x32xf32> to vector<2x8xf32>
    %13 = vector.shape_cast %12 : vector<2x8xf32> to vector<2x8x1xf32>
    %14 = vector.broadcast %8 : vector<2x1x1xf32> to vector<2x8x1xf32>
    %15 = arith.addf %13, %14 : vector<2x8x1xf32>
    %cst_10 = arith.constant dense<0xFF800000> : vector<2x1xf32>
    %16 = vector.multi_reduction <maximumf>, %15, %cst_10 [1] : vector<2x8x1xf32> to vector<2x1xf32>
    %17 = vector.shape_cast %16 : vector<2x1xf32> to vector<2x1x1xf32>
    %18 = vector.broadcast %17 : vector<2x1x1xf32> to vector<2x8x1xf32>
    %19 = arith.subf %15, %18 : vector<2x8x1xf32>
    %20 = math.exp %19 : vector<2x8x1xf32>
    %cst_11 = arith.constant dense<0.000000e+00> : vector<2x1xf32>
    %21 = vector.multi_reduction <add>, %20, %cst_11 [1] : vector<2x8x1xf32> to vector<2x1xf32>
    %22 = vector.shape_cast %21 : vector<2x1xf32> to vector<2x1x1xf32>
    %23 = tpu.reciprocal %22 : vector<2x1x1xf32> -> vector<2x1x1xf32>
    %24 = vector.broadcast %23 : vector<2x1x1xf32> to vector<2x8x1xf32>
    %25 = arith.mulf %20, %24 : vector<2x8x1xf32>
    %c0_12 = arith.constant 0 : index
    %c0_13 = arith.constant 0 : index
    %c0_14 = arith.constant 0 : index
    %26 = vector.load %arg3[%c0_12, %c0_13, %c0_14] : memref<2x8x32xf32, #tpu.memory_space<vmem>>, vector<2x8x32xf32>
    %27 = vector.broadcast %25 : vector<2x8x1xf32> to vector<2x8x32xf32>
    %28 = arith.mulf %26, %27 : vector<2x8x32xf32>
    %cst_15 = arith.constant dense<0.000000e+00> : vector<2x32xf32>
    %29 = vector.multi_reduction <add>, %28, %cst_15 [1] : vector<2x8x32xf32> to vector<2x32xf32>
    %30 = vector.shape_cast %29 : vector<2x32xf32> to vector<2x1x32xf32>
    %c0_16 = arith.constant 0 : index
    %c0_17 = arith.constant 0 : index
    %c0_18 = arith.constant 0 : index
    %31 = vector.load %arg6[%c0_16, %c0_17, %c0_18] : memref<2x1x32xf32, #tpu.memory_space<vmem>>, vector<2x1x32xf32>
    tpu.vector_store %arg6[%c0_16, %c0_17, %c0_18], %30 {strides = array<i32>} : memref<2x1x32xf32, #tpu.memory_space<vmem>>, vector<2x1x32xf32>,
    %c0_19 = arith.constant 0 : index
    %c0_20 = arith.constant 0 : index
    %c0_21 = arith.constant 0 : index
    %32 = vector.load %arg7[%c0_19, %c0_20, %c0_21] : memref<2x8x1xf32, #tpu.memory_space<vmem>>, vector<2x8x1xf32>
    tpu.vector_store %arg7[%c0_19, %c0_20, %c0_21], %25 {strides = array<i32>} : memref<2x8x1xf32, #tpu.memory_space<vmem>>, vector<2x8x1xf32>,
    return
  }
  func.func @transform_0(%arg0: i32) -> (i32, i32, i32) {
    %c0_i32 = arith.constant 0 : i32
    %c0_i32_0 = arith.constant 0 : i32
    %c0_i32_1 = arith.constant 0 : i32
    return %arg0, %c0_i32, %c0_i32_0 : i32, i32, i32
  }
  func.func @transform_1(%arg0: i32) -> (i32, i32, i32) {
    %c0_i32 = arith.constant 0 : i32
    %c0_i32_0 = arith.constant 0 : i32
    %c0_i32_1 = arith.constant 0 : i32
    return %arg0, %c0_i32, %c0_i32_0 : i32, i32, i32
  }
  func.func @transform_2(%arg0: i32) -> (i32, i32, i32) {
    %c0_i32 = arith.constant 0 : i32
    %c0_i32_0 = arith.constant 0 : i32
    %c0_i32_1 = arith.constant 0 : i32
    return %arg0, %c0_i32, %c0_i32_0 : i32, i32, i32
  }
  func.func @transform_3(%arg0: i32) -> (i32, i32) {
    %c0_i32 = arith.constant 0 : i32
    %c0_i32_0 = arith.constant 0 : i32
    %c0_i32_1 = arith.constant 0 : i32
    return %c0_i32, %c0_i32_0 : i32, i32
  }
  func.func @transform_4(%arg0: i32) -> (i32, i32) {
    %c0_i32 = arith.constant 0 : i32
    %c0_i32_0 = arith.constant 0 : i32
    %c0_i32_1 = arith.constant 0 : i32
    return %c0_i32, %c0_i32_0 : i32, i32
  }
  func.func @transform_5(%arg0: i32) -> (i32, i32, i32) {
    %c0_i32 = arith.constant 0 : i32
    %c0_i32_0 = arith.constant 0 : i32
    %c0_i32_1 = arith.constant 0 : i32
    return %arg0, %c0_i32, %c0_i32_0 : i32, i32, i32
  }
  func.func @transform_6(%arg0: i32) -> (i32, i32, i32) {
    %c0_i32 = arith.constant 0 : i32
    %c0_i32_0 = arith.constant 0 : i32
    %c0_i32_1 = arith.constant 0 : i32
    return %arg0, %c0_i32, %c0_i32_0 : i32, i32, i32
  }
}

</mosaic_0001>

<bundles_post_ra>
// kernel: tpu_custom_call.1
= control target key start
LH: loop header
LB: loop body
LE: loop exit
PB: predicated region body
PF: predicated region fallthrough
CT: control target
= control target key end

     0   :  { %12 = vsyncpa [#allocation3], 0  ;;  %s470_s0 = inlined_call_operand.hbm [shape: f32[2,1,32], index: 0, kind: input, shape index: {}]   ;;  %s471_s1 = inlined_call_operand.hbm [shape: f32[2,8,32], index: 1, kind: input, shape index: {}]   ;;  %s472_s2 = inlined_call_operand.hbm [shape: f32[2,8,32], index: 2, kind: input, shape index: {}]   ;;  %s473_s3 = inlined_call_operand.vmem [shape: f32[1,32], index: 3, kind: input, shape index: {}]   ;;  %s474_s4 = inlined_call_operand.vmem [shape: f32[1,32], index: 4, kind: input, shape index: {}]   ;;  %s475_s5 = inlined_call_operand.hbm [shape: f32[2,32], index: 5, kind: output, shape index: {0}]   ;;  %s476_s6 = inlined_call_operand.hbm [shape: f32[2,8], index: 6, kind: output, shape index: {1}]  }
   0x1   :  { %13 = vsyncpa [#allocation6], 0 }
   0x2   :  { %14 = vsyncpa [#allocation4], 0 }
   0x3   :  { %15 = vsyncpa [#allocation10], 0  ;;  %s346_s21 = smov [#allocation5]   ;;  %s228_s25 = scalar_lea.hbm %s471_s1, 256 }
   0x4   :  { %s33_s22 = sshll.u32 %s346_s21, 4  ;;  %p229_p0 = scmp.ne.s32.totalorder %s471_s1, %s228_s25  ;;  %s34_s22 = int_to_ptr.vmem [resolvable:$true] %s33_s22 }
   0x5   :  { %p232_p1 = scmp.lt.u32.totalorder %s228_s25, %s471_s1 }
   0x7   :  { %p234_p2 = pnand %p232_p1, %p229_p0 }
   0x9   :  { %237 = shalt.err (!%p234_p2)
}
   0xa   :  { %s238_s30 = scalar_lea.vmem %s34_s22, 256  ;;  %p243_p4 = scmp.lt.s32.totalorder %s34_s22, %s34_s22 }
   0xb   :  { %p239_p3 = scmp.ne.s32.totalorder %s34_s22, %s238_s30  ;;  %p244_p5 = scmp.lt.s32.totalorder %s238_s30, %s238_s30 }
   0xd   :  { %p245_p6 = por %p244_p5, %p243_p4 }
   0xf   :  { %p246_p7 = pnand %p245_p6, %p239_p3 }
  0x11   :  { %249 = shalt.err (!%p246_p7)
}
  0x12   :  { %s347_s7 = smov 128   ;;  %s348_s8 = smov 8  }
  0x13   :  { %39 = dma.hbm_to_vmem [thread:$0]  %s471_s1, 256, %s34_s22, [#allocation6], %s347_s7, %s347_s7, %s348_s8  }
  0x14   :  { %s349_s11 = smov [#allocation2]   ;;  %s250_s15 = scalar_lea.hbm %s470_s0, 32 }
  0x15   :  { %s21_s12 = sshll.u32 %s349_s11, 4  ;;  %p251_p8 = scmp.ne.s32.totalorder %s470_s0, %s250_s15  ;;  %s22_s12 = int_to_ptr.vmem [resolvable:$true] %s21_s12 }
  0x16   :  { %p254_p9 = scmp.lt.u32.totalorder %s250_s15, %s470_s0 }
  0x18   :  { %p256_p10 = pnand %p254_p9, %p251_p8 }
  0x1a   :  { %259 = shalt.err (!%p256_p10)
}
  0x1b   :  { %s260_s20 = scalar_lea.vmem %s22_s12, 32  ;;  %p265_p12 = scmp.lt.s32.totalorder %s22_s12, %s22_s12 }
  0x1c   :  { %p261_p11 = scmp.ne.s32.totalorder %s22_s12, %s260_s20  ;;  %p266_p13 = scmp.lt.s32.totalorder %s260_s20, %s260_s20 }
  0x1e   :  { %p267_p0 = por %p266_p13, %p265_p12 }
  0x20   :  { %p268_p1 = pnand %p267_p0, %p261_p11 }
  0x22   :  { %271 = shalt.err (!%p268_p1)
}
  0x23   :  { %s350_s1 = smov 16   ;;  %s351_s21 = smov 1  }
  0x24   :  { %27 = dma.hbm_to_vmem [thread:$0]  %s470_s0, 32, %s22_s12, [#allocation3], %s350_s1, %s350_s1, %s351_s21  }
  0x25   :  { %s352_s24 = smov [#allocation7]   ;;  %s272_s28 = scalar_lea.hbm %s472_s2, 256 }
  0x26   :  { %s45_s25 = sshll.u32 %s352_s24, 4  ;;  %p273_p2 = scmp.ne.s32.totalorder %s472_s2, %s272_s28  ;;  %s46_s25 = int_to_ptr.vmem [resolvable:$true] %s45_s25 }
  0x27   :  { %p276_p3 = scmp.lt.u32.totalorder %s272_s28, %s472_s2 }
  0x29   :  { %p278_p4 = pnand %p276_p3, %p273_p2 }
  0x2b   :  { %281 = shalt.err (!%p278_p4)
}
  0x2c   :  { %s282_s11 = scalar_lea.vmem %s46_s25, 256  ;;  %p287_p6 = scmp.lt.s32.totalorder %s46_s25, %s46_s25 }
  0x2d   :  { %p283_p5 = scmp.ne.s32.totalorder %s46_s25, %s282_s11  ;;  %p288_p7 = scmp.lt.s32.totalorder %s282_s11, %s282_s11 }
  0x2f   :  { %p289_p8 = por %p288_p7, %p287_p6 }
  0x31   :  { %p290_p9 = pnand %p289_p8, %p283_p5 }
  0x33   :  { %293 = shalt.err (!%p290_p9)
}
  0x34   :  { %51 = dma.hbm_to_vmem [thread:$0]  %s472_s2, 256, %s46_s25, [#allocation6], %s347_s7, %s347_s7, %s348_s8  }
  0x35   :  { %338 = dma.done.wait [#allocation3], 32  }
  0x36   :  { %339 = vsyncadd [#allocation3], 4294967264 }
  0x37   :  { %340 = dma.done.wait [#allocation6], 512  }
  0x38   :  { %341 = vsyncadd [#allocation6], 4294966784  ;;  %vm73_vm0 = vcmask 253952   ;;  %v65_v0 = vld [vmem:[%s473_s3] sm:$0x1]  ;;  %v69_v4 = vld [vmem:[#allocation5] sm:$0xff]  ;;  %v95_v14 = vlaneseq }
  0x39   :  { %v67_v1 = vld [vmem:[#allocation2] sm:$0x1]  ;;  %vm88_vm1 = vcmask 261120   ;;  %v68_v5 = vld [vmem:[#allocation2 + $0x1] sm:$0x1]  ;;  %v70_v6 = vld [vmem:[#allocation5 + $0x8] sm:$0xff] }
  0x3a   :  { %v210_v2 = vld [vmem:[%s474_s4] ss:$0 sm:$0xff]  ;;  %v71_v3 = vmul.f32 %v67_v1, %v65_v0  ;;  %v72_v8 = vmul.f32 %v68_v5, %v65_v0  ;;  %v96_v15 = vshrl.u32 %v95_v14, 7  ;;  %v167_v55 = vand.u32 127, %v95_v14  ;;  %v139_v57 = vld [vmem:[#allocation7] sm:$0xff]  ;;  %s353_s2 = smov [#allocation9]  }
  0x3b   :  { %v86_v7 = vmul.f32 %v210_v2, %v69_v4  ;;  %v87_v9 = vmul.f32 %v210_v2, %v70_v6  ;;  %v140_v62 = vld [vmem:[#allocation7 + $0x8] sm:$0xff]  ;;  %s196_s3 = sshll.u32 %s353_s2, 4  ;;  %vm159_vm2 = vcmask 1041409   ;;  %vm178_vm3 = vcmask 58368   ;;  %s197_s3 = int_to_ptr.vmem [resolvable:$true] %s196_s3 }
  0x3c   :  { %v74_v10 = vsel %vm73_vm0, %v71_v3, 0.0  ;;  %v77_v12 = vsel %vm73_vm0, %v72_v8, 0.0  ;;  %v97_v16 = vsub.s32 0, %v96_v15  ;;  %v170_v59 = vsub.s32 %v167_v55, %v96_v15  ;;  %s294_s4 = scalar_lea.vmem %s197_s3, 32  ;;  %p299_p11 = scmp.lt.s32.totalorder %s197_s3, %s197_s3 }
  0x3d   :  { %75 = vadd.xlane.f32.xlu0 %v74_v10  ;;  %v89_v11 = vsel %vm88_vm1, %v86_v7, 0.0  ;;  %v92_v13 = vsel %vm88_vm1, %v87_v9, 0.0  ;;  %p295_p10 = scmp.ne.s32.totalorder %s197_s3, %s294_s4  ;;  %p300_p12 = scmp.lt.s32.totalorder %s294_s4, %s294_s4 }
  0x3e   :  { %90 = vadd.xlane.f32.xlu1 %v89_v11 }
  0x3f   :  { %p301_p13 = por %p300_p12, %p299_p11 }
  0x41   :  { %78 = vadd.xlane.f32.xlu0 %v77_v12  ;;  %p302_p0 = pnand %p301_p13, %p295_p10 }
  0x42   :  { %93 = vadd.xlane.f32.xlu1 %v92_v13 }
  0xca   :  { %v76_v17 = vpop.xlane.xlu0 %75 }
  0xcb   :  { %v98_v18 = vrot.slane %v76_v17, %v97_v16  ;;  %v91_v19 = vpop.xlane.xlu1 %90 }
  0xcd   :  { %v103_v20 = vadd.f32 %v98_v18, %v91_v19 }
  0xce   :  { %v79_v21 = vpop.xlane.xlu0 %78 }
  0xcf   :  { %v105_v22 = vrot.slane %v103_v20, 4  ;;  %v102_v23 = vrot.slane %v79_v21, %v97_v16  ;;  %v94_v24 = vpop.xlane.xlu1 %93 }
  0xd1   :  { %v106_v25 = vmax.f32 %v103_v20, %v105_v22  ;;  %v104_v26 = vadd.f32 %v102_v23, %v94_v24 }
  0xd3   :  { %v107_v27 = vrot.slane %v106_v25, 2  ;;  %v111_v28 = vrot.slane %v104_v26, 4 }
  0xd5   :  { %v108_v29 = vmax.f32 %v106_v25, %v107_v27  ;;  %v112_v30 = vmax.f32 %v104_v26, %v111_v28 }
  0xd7   :  { %v109_v31 = vrot.slane %v108_v29, 1  ;;  %v113_v32 = vrot.slane %v112_v30, 2 }
  0xd9   :  { %v110_v33 = vmax.f32 %v108_v29, %v109_v31  ;;  %v114_v34 = vmax.f32 %v112_v30, %v113_v32 }
  0xdb   :  { %v117_v35 = vsub.f32 %v103_v20, %v110_v33  ;;  %v115_v36 = vrot.slane %v114_v34, 1 }
  0xdd   :  { %v119_v37 = vmul.f32 1.442695, %v117_v35  ;;  %v116_v38 = vmax.f32 %v114_v34, %v115_v36 }
  0xdf   :  { %220 = vpow2.f32 %v119_v37  ;;  %v118_v39 = vsub.f32 %v104_v26, %v116_v38 }
  0xe1   :  { %v121_v40 = vmul.f32 1.442695, %v118_v39 }
  0xe3   :  { %222 = vpow2.f32 %v121_v40 }
  0xe9   :  { %v221_v41 = vpop.eup %220 }
  0xea   :  { %v123_v42 = vrot.slane %v221_v41, 4 }
  0xec   :  { %v124_v43 = vadd.f32 %v221_v41, %v123_v42 }
  0xed   :  { %v223_v44 = vpop.eup %222 }
  0xee   :  { %v125_v45 = vrot.slane %v124_v43, 2  ;;  %v129_v46 = vrot.slane %v223_v44, 4 }
  0xf0   :  { %v130_v47 = vadd.f32 %v223_v44, %v129_v46  ;;  %v126_v48 = vadd.f32 %v125_v45, %v124_v43 }
  0xf2   :  { %v131_v49 = vrot.slane %v130_v47, 2  ;;  %v127_v50 = vrot.slane %v126_v48, 1 }
  0xf4   :  { %v128_v51 = vadd.f32 %v127_v50, %v126_v48  ;;  %v132_v52 = vadd.f32 %v131_v49, %v130_v47 }
  0xf6   :  { %v133_v53 = vrot.slane %v132_v52, 1  ;;  %224 = vrcp.f32 %v128_v51 }
  0xf8   :  { %v134_v54 = vadd.f32 %v133_v53, %v132_v52 }
  0xfa   :  { %226 = vrcp.f32 %v134_v54 }
 0x100   :  { %v225_v56 = vpop.eup %224 }
 0x101   :  { %v137_v58 = vmul.f32 %v225_v56, %v221_v41 }
 0x103   :  { %v141_v60 = vmul.f32 %v139_v57, %v137_v58  ;;  %v171_v3 = vrot.slane %v137_v58, %v170_v59 }
 0x104   :  { %v227_v61 = vpop.eup %226 }
 0x105   :  { %v138_v63 = vmul.f32 %v227_v61, %v223_v44  ;;  %v143_v0 = vsel %vm88_vm1, %v141_v60, 0.0 }
 0x106   :  { %v144_v1 = vrot.slane %v143_v0, 4 }
 0x107   :  { %v142_v2 = vmul.f32 %v140_v62, %v138_v63  ;;  %v175_v4 = vrot.slane %v138_v63, %v170_v59 }
 0x108   :  { %v145_v5 = vadd.f32 %v144_v1, %v143_v0 }
 0x109   :  { %v150_v6 = vsel %vm88_vm1, %v142_v2, 0.0  ;;  %v176_v7 = vsel %vm159_vm2, %v175_v4, %v171_v3 }
 0x10a   :  { %v146_v8 = vrot.slane %v145_v5, 2  ;;  %v151_v9 = vrot.slane %v150_v6, 4  ;;  %179 = vst.msk [vmem:[#allocation9] sm:$0x3] %vm178_vm3, %v176_v7 }
 0x10b   :  { %305 = shalt.err (!%p302_p0)
}
 0x10c   :  { %s306_s17 = scalar_lea.hbm %s476_s6, 32 }
 0x10d   :  { %p307_p1 = scmp.ne.s32.totalorder %s476_s6, %s306_s17  ;;  %p310_p2 = scmp.lt.u32.totalorder %s306_s17, %s476_s6 }
 0x10f   :  { %p312_p3 = pnand %p310_p2, %p307_p1 }
 0x111   :  { %315 = shalt.err (!%p312_p3)
}
 0x112   :  { %199 = dma.vmem_to_hbm [thread:$0]  %s197_s3, 32, %s476_s6, [#allocation10]   ;;  %v147_v10 = vadd.f32 %v146_v8, %v145_v5  ;;  %v152_v11 = vadd.f32 %v151_v9, %v150_v6  ;;  %vm162_vm4 = vcmask 254976  }
 0x113   :  { %s354_s23 = smov [#allocation8]  }
 0x114   :  { %v153_v12 = vrot.slane %v152_v11, 2  ;;  %v148_v13 = vrot.slane %v147_v10, 1  ;;  %s186_s24 = sshll.u32 %s354_s23, 4  ;;  %s187_s24 = int_to_ptr.vmem [resolvable:$true] %s186_s24 }
 0x115   :  { %s316_s25 = scalar_lea.vmem %s187_s24, 32  ;;  %p321_p5 = scmp.lt.s32.totalorder %s187_s24, %s187_s24 }
 0x116   :  { %v154_v14 = vadd.f32 %v153_v12, %v152_v11  ;;  %v149_v16 = vadd.f32 %v148_v13, %v147_v10  ;;  %p317_p4 = scmp.ne.s32.totalorder %s187_s24, %s316_s25  ;;  %p322_p6 = scmp.lt.s32.totalorder %s316_s25, %s316_s25 }
 0x118   :  { %v155_v15 = vrot.slane %v154_v14, 1  ;;  %p323_p7 = por %p322_p6, %p321_p5 }
 0x11a   :  { %v156_v17 = vadd.f32 %v155_v15, %v154_v14  ;;  %p324_p8 = pnand %p323_p7, %p317_p4 }
 0x11c   :  { %v160_v18 = vsel %vm159_vm2, %v156_v17, %v149_v16 }
 0x11d   :  { %163 = vst.msk [vmem:[#allocation8] sm:$0x3] %vm162_vm4, %v160_v18 }
 0x11e   :  { %327 = shalt.err (!%p324_p8)
}
 0x11f   :  { %s328_s27 = scalar_lea.hbm %s475_s5, 32 }
 0x120   :  { %p329_p9 = scmp.ne.s32.totalorder %s475_s5, %s328_s27  ;;  %p332_p10 = scmp.lt.u32.totalorder %s328_s27, %s475_s5 }
 0x122   :  { %p334_p11 = pnand %p332_p10, %p329_p9 }
 0x124   :  { %337 = shalt.err (!%p334_p11)
}
 0x125   :  { %189 = dma.vmem_to_hbm [thread:$0]  %s187_s24, 32, %s475_s5, [#allocation4]  }
 0x126   :  { %342 = dma.done.wait [#allocation4], 32  }
 0x127   :  { %343 = vsyncadd [#allocation4], 4294967264 }
 0x128   :  { %344 = dma.done.wait [#allocation10], 32  }
 0x129   :  { %345 = vsyncadd [#allocation10], 4294967264 }
 0x12a   :  { %206 = vsyncpa [#allocation3], 1 }
 0x12b   :  { %207 = vsyncpa [#allocation6], 1 }
 0x12c   :  { %208 = vsyncpa [#allocation4], 1 }
 0x12d   :  { %209 = vsyncpa [#allocation10], 1 }

// kernel: tpu_custom_call.1
= control target key start
LH: loop header
LB: loop body
LE: loop exit
PB: predicated region body
PF: predicated region fallthrough
CT: control target
= control target key end

     0   :  { %12 = vsyncpa [#allocation3], 0  ;;  %s417_s0 = inlined_call_operand.hbm [shape: f32[2,1,32], index: 0, kind: input, shape index: {}]   ;;  %s418_s1 = inlined_call_operand.hbm [shape: f32[2,8,32], index: 1, kind: input, shape index: {}]   ;;  %s419_s2 = inlined_call_operand.hbm [shape: f32[2,8,32], index: 2, kind: input, shape index: {}]   ;;  %s420_s3 = inlined_call_operand.vmem [shape: f32[1,32], index: 3, kind: input, shape index: {}]   ;;  %s421_s4 = inlined_call_operand.vmem [shape: f32[1,32], index: 4, kind: input, shape index: {}]   ;;  %s422_s5 = inlined_call_operand.hbm [shape: f32[2,1,32], index: 5, kind: output, shape index: {0}]   ;;  %s423_s6 = inlined_call_operand.vmem [shape: f32[2,8,1], index: 6, kind: output, shape index: {1}]  }
   0x1   :  { %13 = vsyncpa [#allocation6], 0 }
   0x2   :  { %14 = vsyncpa [#allocation4], 0  ;;  %s294_s21 = smov [#allocation5]   ;;  %s200_s25 = scalar_lea.hbm %s418_s1, 256 }
   0x3   :  { %s32_s22 = sshll.u32 %s294_s21, 4  ;;  %p201_p0 = scmp.ne.s32.totalorder %s418_s1, %s200_s25  ;;  %s33_s22 = int_to_ptr.vmem [resolvable:$true] %s32_s22 }
   0x4   :  { %p204_p1 = scmp.lt.u32.totalorder %s200_s25, %s418_s1 }
   0x6   :  { %p206_p2 = pnand %p204_p1, %p201_p0 }
   0x8   :  { %209 = shalt.err (!%p206_p2)
}
   0x9   :  { %s210_s30 = scalar_lea.vmem %s33_s22, 256  ;;  %p215_p4 = scmp.lt.s32.totalorder %s33_s22, %s33_s22 }
   0xa   :  { %p211_p3 = scmp.ne.s32.totalorder %s33_s22, %s210_s30  ;;  %p216_p5 = scmp.lt.s32.totalorder %s210_s30, %s210_s30 }
   0xc   :  { %p217_p6 = por %p216_p5, %p215_p4 }
   0xe   :  { %p218_p7 = pnand %p217_p6, %p211_p3 }
  0x10   :  { %221 = shalt.err (!%p218_p7)
}
  0x11   :  { %s295_s7 = smov 128   ;;  %s296_s8 = smov 8  }
  0x12   :  { %38 = dma.hbm_to_vmem [thread:$0]  %s418_s1, 256, %s33_s22, [#allocation6], %s295_s7, %s295_s7, %s296_s8  }
  0x13   :  { %s297_s11 = smov [#allocation2]   ;;  %s222_s15 = scalar_lea.hbm %s417_s0, 32 }
  0x14   :  { %s20_s12 = sshll.u32 %s297_s11, 4  ;;  %p223_p8 = scmp.ne.s32.totalorder %s417_s0, %s222_s15  ;;  %s21_s12 = int_to_ptr.vmem [resolvable:$true] %s20_s12 }
  0x15   :  { %p226_p9 = scmp.lt.u32.totalorder %s222_s15, %s417_s0 }
  0x17   :  { %p228_p10 = pnand %p226_p9, %p223_p8 }
  0x19   :  { %231 = shalt.err (!%p228_p10)
}
  0x1a   :  { %s232_s20 = scalar_lea.vmem %s21_s12, 32  ;;  %p237_p12 = scmp.lt.s32.totalorder %s21_s12, %s21_s12 }
  0x1b   :  { %p233_p11 = scmp.ne.s32.totalorder %s21_s12, %s232_s20  ;;  %p238_p13 = scmp.lt.s32.totalorder %s232_s20, %s232_s20 }
  0x1d   :  { %p239_p0 = por %p238_p13, %p237_p12 }
  0x1f   :  { %p240_p1 = pnand %p239_p0, %p233_p11 }
  0x21   :  { %243 = shalt.err (!%p240_p1)
}
  0x22   :  { %s298_s1 = smov 16   ;;  %s299_s21 = smov 1  }
  0x23   :  { %26 = dma.hbm_to_vmem [thread:$0]  %s417_s0, 32, %s21_s12, [#allocation3], %s298_s1, %s298_s1, %s299_s21  }
  0x24   :  { %s300_s24 = smov [#allocation7]   ;;  %s244_s28 = scalar_lea.hbm %s419_s2, 256 }
  0x25   :  { %s44_s25 = sshll.u32 %s300_s24, 4  ;;  %p245_p2 = scmp.ne.s32.totalorder %s419_s2, %s244_s28  ;;  %s45_s25 = int_to_ptr.vmem [resolvable:$true] %s44_s25 }
  0x26   :  { %p248_p3 = scmp.lt.u32.totalorder %s244_s28, %s419_s2 }
  0x28   :  { %p250_p4 = pnand %p248_p3, %p245_p2 }
  0x2a   :  { %253 = shalt.err (!%p250_p4)
}
  0x2b   :  { %s254_s11 = scalar_lea.vmem %s45_s25, 256  ;;  %p259_p6 = scmp.lt.s32.totalorder %s45_s25, %s45_s25 }
  0x2c   :  { %p255_p5 = scmp.ne.s32.totalorder %s45_s25, %s254_s11  ;;  %p260_p7 = scmp.lt.s32.totalorder %s254_s11, %s254_s11 }
  0x2e   :  { %p261_p8 = por %p260_p7, %p259_p6 }
  0x30   :  { %p262_p9 = pnand %p261_p8, %p255_p5 }
  0x32   :  { %265 = shalt.err (!%p262_p9)
}
  0x33   :  { %50 = dma.hbm_to_vmem [thread:$0]  %s419_s2, 256, %s45_s25, [#allocation6], %s295_s7, %s295_s7, %s296_s8  }
  0x34   :  { %288 = dma.done.wait [#allocation3], 32  }
  0x35   :  { %289 = vsyncadd [#allocation3], 4294967264 }
  0x36   :  { %290 = dma.done.wait [#allocation6], 512  }
  0x37   :  { %291 = vsyncadd [#allocation6], 4294966784  ;;  %vm72_vm0 = vcmask 253952   ;;  %v64_v0 = vld [vmem:[%s420_s3] sm:$0x1]  ;;  %v68_v4 = vld [vmem:[#allocation5] sm:$0xff]  ;;  %v94_v14 = vlaneseq }
  0x38   :  { %v66_v1 = vld [vmem:[#allocation2] sm:$0x1]  ;;  %vm87_vm1 = vcmask 261120   ;;  %v67_v5 = vld [vmem:[#allocation2 + $0x1] sm:$0x1]  ;;  %v69_v6 = vld [vmem:[#allocation5 + $0x8] sm:$0xff] }
  0x39   :  { %v183_v2 = vld [vmem:[%s421_s4] ss:$0 sm:$0xff]  ;;  %v70_v3 = vmul.f32 %v66_v1, %v64_v0  ;;  %v71_v8 = vmul.f32 %v67_v5, %v64_v0  ;;  %v95_v15 = vshrl.u32 %v94_v14, 7  ;;  %v138_v56 = vld [vmem:[#allocation7] sm:$0xff]  ;;  %vm158_vm2 = vcmask 7168   ;;  %s301_s8 = smov [#allocation8]  }
  0x3a   :  { %v85_v7 = vmul.f32 %v183_v2, %v68_v4  ;;  %v86_v9 = vmul.f32 %v183_v2, %v69_v6  ;;  %v139_v60 = vld [vmem:[#allocation7 + $0x8] sm:$0xff]  ;;  %s166_s17 = sshll.u32 %s301_s8, 4  ;;  %s167_s17 = int_to_ptr.vmem [resolvable:$true] %s166_s17 }
  0x3b   :  { %v73_v10 = vsel %vm72_vm0, %v70_v3, 0.0  ;;  %v76_v12 = vsel %vm72_vm0, %v71_v8, 0.0  ;;  %v96_v16 = vsub.s32 0, %v95_v15  ;;  %p271_p11 = scmp.lt.s32.totalorder %s167_s17, %s167_s17 }
  0x3c   :  { %74 = vadd.xlane.f32.xlu0 %v73_v10  ;;  %v88_v11 = vsel %vm87_vm1, %v85_v7, 0.0  ;;  %v91_v13 = vsel %vm87_vm1, %v86_v9, 0.0 }
  0x3d   :  { %89 = vadd.xlane.f32.xlu1 %v88_v11 }
  0x40   :  { %77 = vadd.xlane.f32.xlu0 %v76_v12 }
  0x41   :  { %92 = vadd.xlane.f32.xlu1 %v91_v13 }
  0xc9   :  { %v75_v17 = vpop.xlane.xlu0 %74 }
  0xca   :  { %v97_v18 = vrot.slane %v75_v17, %v96_v16  ;;  %v90_v19 = vpop.xlane.xlu1 %89 }
  0xcc   :  { %v102_v20 = vadd.f32 %v97_v18, %v90_v19 }
  0xcd   :  { %v78_v21 = vpop.xlane.xlu0 %77 }
  0xce   :  { %v104_v22 = vrot.slane %v102_v20, 4  ;;  %v101_v23 = vrot.slane %v78_v21, %v96_v16  ;;  %v93_v24 = vpop.xlane.xlu1 %92 }
  0xd0   :  { %v105_v25 = vmax.f32 %v102_v20, %v104_v22  ;;  %v103_v26 = vadd.f32 %v101_v23, %v93_v24 }
  0xd2   :  { %v106_v27 = vrot.slane %v105_v25, 2  ;;  %v110_v28 = vrot.slane %v103_v26, 4 }
  0xd4   :  { %v107_v29 = vmax.f32 %v105_v25, %v106_v27  ;;  %v111_v30 = vmax.f32 %v103_v26, %v110_v28 }
  0xd6   :  { %v108_v31 = vrot.slane %v107_v29, 1  ;;  %v112_v32 = vrot.slane %v111_v30, 2 }
  0xd8   :  { %v109_v33 = vmax.f32 %v107_v29, %v108_v31  ;;  %v113_v34 = vmax.f32 %v111_v30, %v112_v32 }
  0xda   :  { %v116_v35 = vsub.f32 %v102_v20, %v109_v33  ;;  %v114_v36 = vrot.slane %v113_v34, 1 }
  0xdc   :  { %v118_v37 = vmul.f32 1.442695, %v116_v35  ;;  %v115_v38 = vmax.f32 %v113_v34, %v114_v36 }
  0xde   :  { %192 = vpow2.f32 %v118_v37  ;;  %v117_v39 = vsub.f32 %v103_v26, %v115_v38 }
  0xe0   :  { %v120_v40 = vmul.f32 1.442695, %v117_v39 }
  0xe2   :  { %194 = vpow2.f32 %v120_v40 }
  0xe8   :  { %v193_v41 = vpop.eup %192 }
  0xe9   :  { %v122_v42 = vrot.slane %v193_v41, 4 }
  0xeb   :  { %v123_v43 = vadd.f32 %v193_v41, %v122_v42 }
  0xec   :  { %v195_v44 = vpop.eup %194 }
  0xed   :  { %v128_v45 = vrot.slane %v195_v44, 4  ;;  %v124_v46 = vrot.slane %v123_v43, 2 }
  0xef   :  { %v129_v47 = vadd.f32 %v195_v44, %v128_v45  ;;  %v125_v48 = vadd.f32 %v124_v46, %v123_v43 }
  0xf1   :  { %v126_v49 = vrot.slane %v125_v48, 1  ;;  %v130_v50 = vrot.slane %v129_v47, 2 }
  0xf3   :  { %v127_v51 = vadd.f32 %v126_v49, %v125_v48  ;;  %v131_v52 = vadd.f32 %v130_v50, %v129_v47 }
  0xf5   :  { %v132_v53 = vrot.slane %v131_v52, 1  ;;  %196 = vrcp.f32 %v127_v51 }
  0xf7   :  { %v133_v54 = vadd.f32 %v132_v53, %v131_v52 }
  0xf9   :  { %198 = vrcp.f32 %v133_v54 }
  0xff   :  { %v197_v55 = vpop.eup %196 }
 0x100   :  { %v136_v57 = vmul.f32 %v197_v55, %v193_v41 }
 0x102   :  { %v140_v58 = vmul.f32 %v138_v56, %v136_v57  ;;  %159 = vst.msk [vmem:[%s423_s6] sm:$0xff] %vm158_vm2, %v136_v57 }
 0x103   :  { %v199_v59 = vpop.eup %198 }
 0x104   :  { %v137_v61 = vmul.f32 %v199_v59, %v195_v44  ;;  %v142_v62 = vsel %vm87_vm1, %v140_v58, 0.0 }
 0x105   :  { %v143_v63 = vrot.slane %v142_v62, 4 }
 0x106   :  { %v141_v0 = vmul.f32 %v139_v60, %v137_v61  ;;  %160 = vst.msk [vmem:[%s423_s6 + $0x8] sm:$0xff] %vm158_vm2, %v137_v61  ;;  %s266_s6 = scalar_lea.vmem %s167_s17, 32 }
 0x107   :  { %v144_v1 = vadd.f32 %v143_v63, %v142_v62  ;;  %p267_p10 = scmp.ne.s32.totalorder %s167_s17, %s266_s6  ;;  %p272_p12 = scmp.lt.s32.totalorder %s266_s6, %s266_s6 }
 0x108   :  { %v149_v2 = vsel %vm87_vm1, %v141_v0, 0.0 }
 0x109   :  { %v145_v3 = vrot.slane %v144_v1, 2  ;;  %v150_v4 = vrot.slane %v149_v2, 4  ;;  %p273_p13 = por %p272_p12, %p271_p11 }
 0x10b   :  { %v146_v5 = vadd.f32 %v145_v3, %v144_v1  ;;  %v151_v6 = vadd.f32 %v150_v4, %v149_v2  ;;  %p274_p0 = pnand %p273_p13, %p267_p10 }
 0x10d   :  { %v147_v7 = vrot.slane %v146_v5, 1  ;;  %v152_v8 = vrot.slane %v151_v6, 2 }
 0x10f   :  { %v148_v9 = vadd.f32 %v147_v7, %v146_v5  ;;  %v153_v10 = vadd.f32 %v152_v8, %v151_v6 }
 0x111   :  { %v154_v11 = vrot.slane %v153_v10, 1  ;;  %156 = vst.msk [vmem:[#allocation8] sm:$0x1] %vm72_vm0, %v148_v9 }
 0x113   :  { %v155_v12 = vadd.f32 %v154_v11, %v153_v10 }
 0x115   :  { %157 = vst.msk [vmem:[#allocation8 + $0x1] sm:$0x1] %vm72_vm0, %v155_v12 }
 0x116   :  { %277 = shalt.err (!%p274_p0)
}
 0x117   :  { %s278_s20 = scalar_lea.hbm %s422_s5, 32 }
 0x118   :  { %p279_p1 = scmp.ne.s32.totalorder %s422_s5, %s278_s20  ;;  %p282_p2 = scmp.lt.u32.totalorder %s278_s20, %s422_s5 }
 0x11a   :  { %p284_p3 = pnand %p282_p2, %p279_p1 }
 0x11c   :  { %287 = shalt.err (!%p284_p3)
}
 0x11d   :  { %172 = dma.vmem_to_hbm [thread:$0]  %s167_s17, 32, %s422_s5, [#allocation4], %s298_s1, %s298_s1, %s299_s21  }
 0x11e   :  { %292 = dma.done.wait [#allocation4], 32  }
 0x11f   :  { %293 = vsyncadd [#allocation4], 4294967264 }
 0x120   :  { %180 = vsyncpa [#allocation3], 1 }
 0x121   :  { %181 = vsyncpa [#allocation6], 1 }
 0x122   :  { %182 = vsyncpa [#allocation4], 1 }

</bundles_post_ra>
